<compile_context>
chip_gen: v5e
topology: v5e:2x2
jax: 0.10.0
libtpu: 0.0.40
codegen_flags: <defaults>
</compile_context>

<pallas_src>
import jax
import jax.numpy as jnp
from jax.experimental import pallas as pl
from jax.experimental.pallas import tpu as pltpu


def _round_up(x: int, m: int) -> int:
    return ((x + m - 1) // m) * m


def _cdiv(a: int, b: int) -> int:
    return (a + b - 1) // b


def _make_mae_kernel(n_rows: int, tk: int, mask_rows: bool):
    """Kernel factory closing over static layout constants."""
    n_chunks = tk // 128

    def kernel(p_ref, t_ref, out_ref):
        k = pl.program_id(1)

        # Output block is resident across the (arbitrary) k axis.
        @pl.when(k == 0)
        def _init():
            out_ref[...] = jnp.zeros_like(out_ref)

        tb = out_ref.shape[0]

        # Fold the abs-diff per 128-lane chunk: live state stays ~(tb, 128)
        # f32 instead of a full (tb, tk) intermediate (no VMEM spills, no
        # extra vst traffic on v5e's single store slot).
        part = jnp.zeros((tb, 128), dtype=jnp.float32)
        for m in range(n_chunks):
            sl = slice(m * 128, (m + 1) * 128)
            p = p_ref[:, sl].astype(jnp.float32)
            t = t_ref[:, sl].astype(jnp.float32)
            part = part + jnp.abs(p - t)

        if mask_rows:
            # Last row block is ragged: rows >= n_rows hold unspecified data.
            i = pl.program_id(0)
            row = i * tb + jax.lax.broadcasted_iota(jnp.int32, (tb, 1), 0)
            part = jnp.where(row < n_rows, part, 0.0)

        out_ref[...] += part

    return kernel


def mae(preds, targets, *, target_block_bytes: int = 8 << 20,
        tb: int | None = None, tk: int | None = None, n_k: int | None = None):
    """Mean absolute error over all elements (== F.l1_loss(preds, targets))."""
    preds = jnp.asarray(preds)
    targets = jnp.asarray(targets)
    assert preds.shape == targets.shape, (preds.shape, targets.shape)

    # Keep floating inputs at native width (halves HBM traffic for bf16).
    # TODO(synk): integer inputs are widened to f32; exact only below 2^24.
    if not jnp.issubdtype(preds.dtype, jnp.floating):
        preds = preds.astype(jnp.float32)
    if not jnp.issubdtype(targets.dtype, jnp.floating):
        targets = targets.astype(jnp.float32)

    e = int(preds.size)
    p_flat = preds.reshape(-1)
    t_flat = targets.reshape(-1)

    if e < 128:  # too small for a lane-aligned kernel; plain jnp is optimal.
        return jnp.mean(
            jnp.abs(p_flat.astype(jnp.float32) - t_flat.astype(jnp.float32)))

    # ---- Byte-based tile selection (dtype-aware) ---------------------------
    isz = preds.dtype.itemsize + targets.dtype.itemsize
    block_elems = max(1024, int(target_block_bytes) // isz)
    tb_target = 256

    if tk is None:
        tk = min(block_elems // tb_target, (e // 128) * 128)
    tk = max(128, min((tk // 128) * 128, (e // 128) * 128))

    r0 = e // tk
    if n_k is None:
        n_k = max(1, min(r0 // (8 * tb_target), 256))
    c = n_k * tk
    r = e // c
    if r == 0:  # guard against pathological overrides
        n_k, c = 1, tk
        r = e // c
    bulk = r * c
    tail = e - bulk                      # handled in plain jnp (< c elements)

    if tb is None:
        if r < 8:
            tb = r                       # block row dim == full array dim
        else:
            tb = min(tb_target, _round_up(r, 8))
            if _cdiv(r, tb) == 1 and r > 8:
                # v7x megacore: make sure the parallel axis has >= 2 blocks.
                tb = max(8, _round_up(_cdiv(r, 2), 8))
    grid_rows = _cdiv(r, tb)
    mask_rows = (grid_rows * tb) != r
    out_rows = grid_rows * tb
    grid = (grid_rows, n_k)

    # Pure bitcast when bulk == e (the common case); otherwise a prefix slice
    # that allow_input_fusion lets XLA fuse into the Mosaic call.
    p2 = p_flat[:bulk].reshape(r, c)
    t2 = t_flat[:bulk].reshape(r, c)

    # VMEM: 2 inputs x 2 buffers + double-buffered (tb, 128) output + ~75%.
    in_bytes = 2 * tb * tk * isz
    out_bytes = 2 * tb * 128 * 4
    vmem_limit = int(min(44 << 20, max((in_bytes + out_bytes) * 7 // 4, 16 << 20)))

    cost = pl.CostEstimate(
        flops=3 * e,                      # sub + abs + add per element
        transcendentals=0,
        bytes_accessed=bulk * isz + out_rows * 128 * 4,
    )

    partial = pl.pallas_call(
        _make_mae_kernel(r, tk, mask_rows),
        out_shape=jax.ShapeDtypeStruct((out_rows, 128), jnp.float32),
        grid_spec=pltpu.PrefetchScalarGridSpec(
            num_scalar_prefetch=0,
            grid=grid,
            in_specs=[
                pl.BlockSpec((tb, tk), lambda i, k: (i, k)),
                pl.BlockSpec((tb, tk), lambda i, k: (i, k)),
            ],
            out_specs=pl.BlockSpec((tb, 128), lambda i, k: (i, 0)),
        ),
        compiler_params=pltpu.CompilerParams(
            dimension_semantics=("parallel", "arbitrary"),
            vmem_limit_bytes=vmem_limit,
            allow_input_fusion=[True, True],
        ),
        cost_estimate=cost,
    )(p2, t2)

    total = jnp.sum(partial, dtype=jnp.float32)
    if tail:
        total = total + jnp.sum(
            jnp.abs(p_flat[bulk:].astype(jnp.float32)
                    - t_flat[bulk:].astype(jnp.float32)),
            dtype=jnp.float32)
    return total / jnp.float32(e)


if __name__ == "__main__":
    key = jax.random.PRNGKey(0)
    k1, k2, k3, k4, k5, k6 = jax.random.split(key, 6)

    # ---- Test 1: small f32 input (typical module shape), auto tiling -------
    shape1 = (2, 4, 16, 16)
    preds1 = jax.random.normal(k1, shape1, dtype=jnp.float32)
    targets1 = jax.random.normal(k2, shape1, dtype=jnp.float32)
    loss1 = mae(preds1, targets1)
    jax.block_until_ready(loss1)
    ref1 = jnp.mean(jnp.abs(preds1 - targets1))
    assert jnp.allclose(loss1, ref1, rtol=1e-5, atol=1e-6), (loss1, ref1)

    # ---- Test 2: bf16 inputs with a real (parallel x arbitrary) grid,
    #              exercising k-axis accumulation and the bf16 widening path --
    shape2 = (4, 4, 64, 64)
    preds2 = jax.random.normal(k3, shape2, dtype=jnp.bfloat16)
    targets2 = jax.random.normal(k4, shape2, dtype=jnp.bfloat16)
    loss2 = mae(preds2, targets2, tb=8, tk=512, n_k=4)
    jax.block_until_ready(loss2)
    ref2 = jnp.mean(
        jnp.abs(preds2.astype(jnp.float32) - targets2.astype(jnp.float32)))
    assert jnp.allclose(loss2, ref2, rtol=2e-5, atol=1e-6), (loss2, ref2)

    # ---- Test 3: odd (non-aligned) shape, exercising the ragged-row mask
    #              and the jnp-handled tail --------------------------------
    shape3 = (5, 7, 13, 3)                 # 1365 elements
    preds3 = jax.random.normal(k5, shape3, dtype=jnp.float32)
    targets3 = jax.random.normal(k6, shape3, dtype=jnp.float32)
    loss3 = mae(preds3, targets3, tb=8, tk=128, n_k=1)
    jax.block_until_ready(loss3)
    ref3 = jnp.mean(jnp.abs(preds3 - targets3))
    assert jnp.allclose(loss3, ref3, rtol=1e-5, atol=1e-6), (loss3, ref3)

    print("KERNEL_OK")
</pallas_src>

<mosaic_0001>
module attributes {stable_mosaic.version = 11 : i64} {
  func.func @kernel(%arg0: i32, %arg1: i32, %arg2: memref<1x2048xf32, #tpu.memory_space<vmem>>, %arg3: memref<1x2048xf32, #tpu.memory_space<vmem>>, %arg4: memref<1x128xf32, #tpu.memory_space<vmem>>) attributes {dimension_semantics = [#tpu.dimension_semantics<parallel>, #tpu.dimension_semantics<arbitrary>], iteration_bounds = array<i64: 1, 1>, scalar_prefetch = 0 : i64, scratch_operands = 0 : i64, tpu.core_type = #tpu.core_type<tc>, window_params = [{transform_indices = @transform_0, window_bounds = array<i64: 1, 2048>}, {transform_indices = @transform_1, window_bounds = array<i64: 1, 2048>}, {transform_indices = @transform_2, window_bounds = array<i64: 1, 128>}]} {
    %c0_i32 = arith.constant 0 : i32
    %0 = arith.cmpi eq, %arg1, %c0_i32 : i32
    %1 = arith.extui %0 : i1 to i32
    %c0_i32_0 = arith.constant 0 : i32
    %2 = arith.cmpi ne, %1, %c0_i32_0 : i32
    scf.if %2 {
      %cst_53 = arith.constant 0.000000e+00 : f32
      %87 = vector.broadcast %cst_53 : f32 to vector<1x128xf32>
      %c0_54 = arith.constant 0 : index
      %c0_55 = arith.constant 0 : index
      %88 = vector.load %arg4[%c0_54, %c0_55] : memref<1x128xf32, #tpu.memory_space<vmem>>, vector<1x128xf32>
      tpu.vector_store %arg4[%c0_54, %c0_55], %87 {strides = array<i32>} : memref<1x128xf32, #tpu.memory_space<vmem>>, vector<1x128xf32>,
    } else {
    }
    %cst = arith.constant 0.000000e+00 : f32
    %3 = vector.broadcast %cst : f32 to vector<1x128xf32>
    %c0 = arith.constant 0 : index
    %c0_1 = arith.constant 0 : index
    %4 = vector.load %arg2[%c0, %c0_1] : memref<1x2048xf32, #tpu.memory_space<vmem>>, vector<1x128xf32>
    %c0_2 = arith.constant 0 : index
    %c0_3 = arith.constant 0 : index
    %5 = vector.load %arg3[%c0_2, %c0_3] : memref<1x2048xf32, #tpu.memory_space<vmem>>, vector<1x128xf32>
    %6 = arith.subf %4, %5 : vector<1x128xf32>
    %7 = math.absf %6 : vector<1x128xf32>
    %8 = arith.addf %3, %7 : vector<1x128xf32>
    %c0_4 = arith.constant 0 : index
    %c128 = arith.constant 128 : index
    %9 = vector.load %arg2[%c0_4, %c128] : memref<1x2048xf32, #tpu.memory_space<vmem>>, vector<1x128xf32>
    %c0_5 = arith.constant 0 : index
    %c128_6 = arith.constant 128 : index
    %10 = vector.load %arg3[%c0_5, %c128_6] : memref<1x2048xf32, #tpu.memory_space<vmem>>, vector<1x128xf32>
    %11 = arith.subf %9, %10 : vector<1x128xf32>
    %12 = math.absf %11 : vector<1x128xf32>
    %13 = arith.addf %8, %12 : vector<1x128xf32>
    %c0_7 = arith.constant 0 : index
    %c256 = arith.constant 256 : index
    %14 = vector.load %arg2[%c0_7, %c256] : memref<1x2048xf32, #tpu.memory_space<vmem>>, vector<1x128xf32>
    %c0_8 = arith.constant 0 : index
    %c256_9 = arith.constant 256 : index
    %15 = vector.load %arg3[%c0_8, %c256_9] : memref<1x2048xf32, #tpu.memory_space<vmem>>, vector<1x128xf32>
    %16 = arith.subf %14, %15 : vector<1x128xf32>
    %17 = math.absf %16 : vector<1x128xf32>
    %18 = arith.addf %13, %17 : vector<1x128xf32>
    %c0_10 = arith.constant 0 : index
    %c384 = arith.constant 384 : index
    %19 = vector.load %arg2[%c0_10, %c384] : memref<1x2048xf32, #tpu.memory_space<vmem>>, vector<1x128xf32>
    %c0_11 = arith.constant 0 : index
    %c384_12 = arith.constant 384 : index
    %20 = vector.load %arg3[%c0_11, %c384_12] : memref<1x2048xf32, #tpu.memory_space<vmem>>, vector<1x128xf32>
    %21 = arith.subf %19, %20 : vector<1x128xf32>
    %22 = math.absf %21 : vector<1x128xf32>
    %23 = arith.addf %18, %22 : vector<1x128xf32>
    %c0_13 = arith.constant 0 : index
    %c512 = arith.constant 512 : index
    %24 = vector.load %arg2[%c0_13, %c512] : memref<1x2048xf32, #tpu.memory_space<vmem>>, vector<1x128xf32>
    %c0_14 = arith.constant 0 : index
    %c512_15 = arith.constant 512 : index
    %25 = vector.load %arg3[%c0_14, %c512_15] : memref<1x2048xf32, #tpu.memory_space<vmem>>, vector<1x128xf32>
    %26 = arith.subf %24, %25 : vector<1x128xf32>
    %27 = math.absf %26 : vector<1x128xf32>
    %28 = arith.addf %23, %27 : vector<1x128xf32>
    %c0_16 = arith.constant 0 : index
    %c640 = arith.constant 640 : index
    %29 = vector.load %arg2[%c0_16, %c640] : memref<1x2048xf32, #tpu.memory_space<vmem>>, vector<1x128xf32>
    %c0_17 = arith.constant 0 : index
    %c640_18 = arith.constant 640 : index
    %30 = vector.load %arg3[%c0_17, %c640_18] : memref<1x2048xf32, #tpu.memory_space<vmem>>, vector<1x128xf32>
    %31 = arith.subf %29, %30 : vector<1x128xf32>
    %32 = math.absf %31 : vector<1x128xf32>
    %33 = arith.addf %28, %32 : vector<1x128xf32>
    %c0_19 = arith.constant 0 : index
    %c768 = arith.constant 768 : index
    %34 = vector.load %arg2[%c0_19, %c768] : memref<1x2048xf32, #tpu.memory_space<vmem>>, vector<1x128xf32>
    %c0_20 = arith.constant 0 : index
    %c768_21 = arith.constant 768 : index
    %35 = vector.load %arg3[%c0_20, %c768_21] : memref<1x2048xf32, #tpu.memory_space<vmem>>, vector<1x128xf32>
    %36 = arith.subf %34, %35 : vector<1x128xf32>
    %37 = math.absf %36 : vector<1x128xf32>
    %38 = arith.addf %33, %37 : vector<1x128xf32>
    %c0_22 = arith.constant 0 : index
    %c896 = arith.constant 896 : index
    %39 = vector.load %arg2[%c0_22, %c896] : memref<1x2048xf32, #tpu.memory_space<vmem>>, vector<1x128xf32>
    %c0_23 = arith.constant 0 : index
    %c896_24 = arith.constant 896 : index
    %40 = vector.load %arg3[%c0_23, %c896_24] : memref<1x2048xf32, #tpu.memory_space<vmem>>, vector<1x128xf32>
    %41 = arith.subf %39, %40 : vector<1x128xf32>
    %42 = math.absf %41 : vector<1x128xf32>
    %43 = arith.addf %38, %42 : vector<1x128xf32>
    %c0_25 = arith.constant 0 : index
    %c1024 = arith.constant 1024 : index
    %44 = vector.load %arg2[%c0_25, %c1024] : memref<1x2048xf32, #tpu.memory_space<vmem>>, vector<1x128xf32>
    %c0_26 = arith.constant 0 : index
    %c1024_27 = arith.constant 1024 : index
    %45 = vector.load %arg3[%c0_26, %c1024_27] : memref<1x2048xf32, #tpu.memory_space<vmem>>, vector<1x128xf32>
    %46 = arith.subf %44, %45 : vector<1x128xf32>
    %47 = math.absf %46 : vector<1x128xf32>
    %48 = arith.addf %43, %47 : vector<1x128xf32>
    %c0_28 = arith.constant 0 : index
    %c1152 = arith.constant 1152 : index
    %49 = vector.load %arg2[%c0_28, %c1152] : memref<1x2048xf32, #tpu.memory_space<vmem>>, vector<1x128xf32>
    %c0_29 = arith.constant 0 : index
    %c1152_30 = arith.constant 1152 : index
    %50 = vector.load %arg3[%c0_29, %c1152_30] : memref<1x2048xf32, #tpu.memory_space<vmem>>, vector<1x128xf32>
    %51 = arith.subf %49, %50 : vector<1x128xf32>
    %52 = math.absf %51 : vector<1x128xf32>
    %53 = arith.addf %48, %52 : vector<1x128xf32>
    %c0_31 = arith.constant 0 : index
    %c1280 = arith.constant 1280 : index
    %54 = vector.load %arg2[%c0_31, %c1280] : memref<1x2048xf32, #tpu.memory_space<vmem>>, vector<1x128xf32>
    %c0_32 = arith.constant 0 : index
    %c1280_33 = arith.constant 1280 : index
    %55 = vector.load %arg3[%c0_32, %c1280_33] : memref<1x2048xf32, #tpu.memory_space<vmem>>, vector<1x128xf32>
    %56 = arith.subf %54, %55 : vector<1x128xf32>
    %57 = math.absf %56 : vector<1x128xf32>
    %58 = arith.addf %53, %57 : vector<1x128xf32>
    %c0_34 = arith.constant 0 : index
    %c1408 = arith.constant 1408 : index
    %59 = vector.load %arg2[%c0_34, %c1408] : memref<1x2048xf32, #tpu.memory_space<vmem>>, vector<1x128xf32>
    %c0_35 = arith.constant 0 : index
    %c1408_36 = arith.constant 1408 : index
    %60 = vector.load %arg3[%c0_35, %c1408_36] : memref<1x2048xf32, #tpu.memory_space<vmem>>, vector<1x128xf32>
    %61 = arith.subf %59, %60 : vector<1x128xf32>
    %62 = math.absf %61 : vector<1x128xf32>
    %63 = arith.addf %58, %62 : vector<1x128xf32>
    %c0_37 = arith.constant 0 : index
    %c1536 = arith.constant 1536 : index
    %64 = vector.load %arg2[%c0_37, %c1536] : memref<1x2048xf32, #tpu.memory_space<vmem>>, vector<1x128xf32>
    %c0_38 = arith.constant 0 : index
    %c1536_39 = arith.constant 1536 : index
    %65 = vector.load %arg3[%c0_38, %c1536_39] : memref<1x2048xf32, #tpu.memory_space<vmem>>, vector<1x128xf32>
    %66 = arith.subf %64, %65 : vector<1x128xf32>
    %67 = math.absf %66 : vector<1x128xf32>
    %68 = arith.addf %63, %67 : vector<1x128xf32>
    %c0_40 = arith.constant 0 : index
    %c1664 = arith.constant 1664 : index
    %69 = vector.load %arg2[%c0_40, %c1664] : memref<1x2048xf32, #tpu.memory_space<vmem>>, vector<1x128xf32>
    %c0_41 = arith.constant 0 : index
    %c1664_42 = arith.constant 1664 : index
    %70 = vector.load %arg3[%c0_41, %c1664_42] : memref<1x2048xf32, #tpu.memory_space<vmem>>, vector<1x128xf32>
    %71 = arith.subf %69, %70 : vector<1x128xf32>
    %72 = math.absf %71 : vector<1x128xf32>
    %73 = arith.addf %68, %72 : vector<1x128xf32>
    %c0_43 = arith.constant 0 : index
    %c1792 = arith.constant 1792 : index
    %74 = vector.load %arg2[%c0_43, %c1792] : memref<1x2048xf32, #tpu.memory_space<vmem>>, vector<1x128xf32>
    %c0_44 = arith.constant 0 : index
    %c1792_45 = arith.constant 1792 : index
    %75 = vector.load %arg3[%c0_44, %c1792_45] : memref<1x2048xf32, #tpu.memory_space<vmem>>, vector<1x128xf32>
    %76 = arith.subf %74, %75 : vector<1x128xf32>
    %77 = math.absf %76 : vector<1x128xf32>
    %78 = arith.addf %73, %77 : vector<1x128xf32>
    %c0_46 = arith.constant 0 : index
    %c1920 = arith.constant 1920 : index
    %79 = vector.load %arg2[%c0_46, %c1920] : memref<1x2048xf32, #tpu.memory_space<vmem>>, vector<1x128xf32>
    %c0_47 = arith.constant 0 : index
    %c1920_48 = arith.constant 1920 : index
    %80 = vector.load %arg3[%c0_47, %c1920_48] : memref<1x2048xf32, #tpu.memory_space<vmem>>, vector<1x128xf32>
    %81 = arith.subf %79, %80 : vector<1x128xf32>
    %82 = math.absf %81 : vector<1x128xf32>
    %83 = arith.addf %78, %82 : vector<1x128xf32>
    %c0_49 = arith.constant 0 : index
    %c0_50 = arith.constant 0 : index
    %84 = vector.load %arg4[%c0_49, %c0_50] : memref<1x128xf32, #tpu.memory_space<vmem>>, vector<1x128xf32>
    %85 = arith.addf %84, %83 : vector<1x128xf32>
    %c0_51 = arith.constant 0 : index
    %c0_52 = arith.constant 0 : index
    %86 = vector.load %arg4[%c0_51, %c0_52] : memref<1x128xf32, #tpu.memory_space<vmem>>, vector<1x128xf32>
    tpu.vector_store %arg4[%c0_51, %c0_52], %85 {strides = array<i32>} : memref<1x128xf32, #tpu.memory_space<vmem>>, vector<1x128xf32>,
    return
  }
  func.func @transform_0(%arg0: i32, %arg1: i32) -> (i32, i32) {
    %c0_i32 = arith.constant 0 : i32
    return %arg0, %arg1 : i32, i32
  }
  func.func @transform_1(%arg0: i32, %arg1: i32) -> (i32, i32) {
    %c0_i32 = arith.constant 0 : i32
    return %arg0, %arg1 : i32, i32
  }
  func.func @transform_2(%arg0: i32, %arg1: i32) -> (i32, i32) {
    %c0_i32 = arith.constant 0 : i32
    %c0_i32_0 = arith.constant 0 : i32
    return %arg0, %c0_i32 : i32, i32
  }
}

</mosaic_0001>

<bundles_post_ra>
// kernel: tpu_custom_call.1
= control target key start
LH: loop header
LB: loop body
LE: loop exit
PB: predicated region body
PF: predicated region fallthrough
CT: control target
= control target key end

     0   :  { %7 = vsyncpa [#allocation3], 0  ;;  %s256_s0 = inlined_call_operand.hbm [shape: f32[1,2048], index: 0, kind: input, shape index: {}]   ;;  %s257_s1 = inlined_call_operand.hbm [shape: f32[1,2048], index: 1, kind: input, shape index: {}]   ;;  %s258_s2 = inlined_call_operand.hbm [shape: f32[1,128], index: 2, kind: output, shape index: {}]  }
   0x1   :  { %8 = vsyncpa [#allocation6], 0 }
   0x2   :  { %9 = vsyncpa [#allocation4], 0  ;;  %s15_s11 = sshll.u32 %s256_s0, 4  ;;  %s228_s12 = smov [#allocation2]   ;;  %s16_s11 = int_to_ptr.hbm [resolvable:$true] %s15_s11 }
   0x3   :  { %s17_s13 = sshll.u32 %s228_s12, 4  ;;  %s26_s16 = sshll.u32 %s257_s1, 4  ;;  %s18_s13 = int_to_ptr.vmem [resolvable:$true] %s17_s13  ;;  %s27_s16 = int_to_ptr.hbm [resolvable:$true] %s26_s16 }
   0x4   :  { %20 = dma.hbm_to_vmem [thread:$0]  %s16_s11, 256, %s18_s13, [#allocation3]  }
   0x5   :  { %s229_s17 = smov [#allocation5]  }
   0x6   :  { %s28_s18 = sshll.u32 %s229_s17, 4  ;;  %s29_s18 = int_to_ptr.vmem [resolvable:$true] %s28_s18 }
   0x7   :  { %31 = dma.hbm_to_vmem [thread:$0]  %s27_s16, 256, %s29_s18, [#allocation6]  }
   0x8   :  { %222 = dma.done.wait [#allocation3], 256  }
   0x9   :  { %223 = vsyncadd [#allocation3], 4294967040 }
   0xa   :  { %224 = dma.done.wait [#allocation6], 256  }
   0xb   :  { %225 = vsyncadd [#allocation6], 4294967040  ;;  %v230_v0 = vmov 0.0   ;;  %v45_v1 = vld [vmem:[#allocation2] sm:$0x1]  ;;  %s231_s0 = smov [#allocation7]  }
   0xc   :  { %44 = vst [vmem:[#allocation7] sm:$0x1] %v230_v0  ;;  %v46_v2 = vld [vmem:[#allocation5] sm:$0x1]  ;;  %v50_v3 = vld [vmem:[#allocation2 + $0x1] sm:$0x1] }
   0xd   :  { %v47_v4 = vsub.f32 %v45_v1, %v46_v2  ;;  %v51_v5 = vld [vmem:[#allocation5 + $0x1] sm:$0x1]  ;;  %v55_v6 = vld [vmem:[#allocation2 + $0x2] sm:$0x1]  ;;  %v56_v7 = vld [vmem:[#allocation5 + $0x2] sm:$0x1] }
   0xe   :  { %v52_v8 = vsub.f32 %v50_v3, %v51_v5  ;;  %v57_v9 = vsub.f32 %v55_v6, %v56_v7  ;;  %v60_v10 = vld [vmem:[#allocation2 + $0x3] sm:$0x1]  ;;  %v61_v11 = vld [vmem:[#allocation5 + $0x3] sm:$0x1]  ;;  %v65_v12 = vld [vmem:[#allocation2 + $0x4] sm:$0x1] }
   0xf   :  { %v48_v13 = vand.u32 2147483647, %v47_v4  ;;  %v62_v14 = vsub.f32 %v60_v10, %v61_v11  ;;  %v66_v15 = vld [vmem:[#allocation5 + $0x4] sm:$0x1]  ;;  %v70_v16 = vld [vmem:[#allocation2 + $0x5] sm:$0x1] }
  0x10   :  { %v53_v17 = vand.u32 2147483647, %v52_v8  ;;  %v58_v18 = vand.u32 2147483647, %v57_v9  ;;  %v67_v19 = vsub.f32 %v65_v12, %v66_v15  ;;  %v71_v20 = vld [vmem:[#allocation5 + $0x5] sm:$0x1] }
  0x11   :  { %v75_v21 = vld [vmem:[#allocation2 + $0x6] sm:$0x1]  ;;  %v76_v22 = vld [vmem:[#allocation5 + $0x6] sm:$0x1]  ;;  %v63_v24 = vand.u32 2147483647, %v62_v14  ;;  %v72_v25 = vsub.f32 %v70_v16, %v71_v20 }
  0x12   :  { %v54_v23 = vadd.f32 %v53_v17, %v48_v13  ;;  %v80_v26 = vld [vmem:[#allocation2 + $0x7] sm:$0x1]  ;;  %v81_v27 = vld [vmem:[#allocation5 + $0x7] sm:$0x1]  ;;  %v68_v29 = vand.u32 2147483647, %v67_v19  ;;  %v77_v30 = vsub.f32 %v75_v21, %v76_v22 }
  0x13   :  { %v85_v31 = vld [vmem:[#allocation2 + $0x8] sm:$0x1]  ;;  %v86_v32 = vld [vmem:[#allocation5 + $0x8] sm:$0x1]  ;;  %v73_v34 = vand.u32 2147483647, %v72_v25  ;;  %v82_v35 = vsub.f32 %v80_v26, %v81_v27 }
  0x14   :  { %v59_v28 = vadd.f32 %v58_v18, %v54_v23  ;;  %v90_v36 = vld [vmem:[#allocation2 + $0x9] sm:$0x1]  ;;  %v91_v37 = vld [vmem:[#allocation5 + $0x9] sm:$0x1]  ;;  %v78_v39 = vand.u32 2147483647, %v77_v30  ;;  %v87_v40 = vsub.f32 %v85_v31, %v86_v32 }
  0x15   :  { %v95_v41 = vld [vmem:[#allocation2 + $0xa] sm:$0x1]  ;;  %v96_v42 = vld [vmem:[#allocation5 + $0xa] sm:$0x1]  ;;  %v83_v44 = vand.u32 2147483647, %v82_v35  ;;  %v92_v45 = vsub.f32 %v90_v36, %v91_v37 }
  0x16   :  { %v64_v33 = vadd.f32 %v63_v24, %v59_v28  ;;  %v100_v46 = vld [vmem:[#allocation2 + $0xb] sm:$0x1]  ;;  %v101_v47 = vld [vmem:[#allocation5 + $0xb] sm:$0x1]  ;;  %v88_v49 = vand.u32 2147483647, %v87_v40  ;;  %v97_v50 = vsub.f32 %v95_v41, %v96_v42 }
  0x17   :  { %v105_v51 = vld [vmem:[#allocation2 + $0xc] sm:$0x1]  ;;  %v106_v52 = vld [vmem:[#allocation5 + $0xc] sm:$0x1]  ;;  %v93_v54 = vand.u32 2147483647, %v92_v45  ;;  %v102_v55 = vsub.f32 %v100_v46, %v101_v47 }
  0x18   :  { %v69_v38 = vadd.f32 %v68_v29, %v64_v33  ;;  %v110_v56 = vld [vmem:[#allocation2 + $0xd] sm:$0x1]  ;;  %v111_v57 = vld [vmem:[#allocation5 + $0xd] sm:$0x1]  ;;  %v98_v59 = vand.u32 2147483647, %v97_v50  ;;  %v107_v60 = vsub.f32 %v105_v51, %v106_v52 }
  0x19   :  { %v115_v61 = vld [vmem:[#allocation2 + $0xe] sm:$0x1]  ;;  %v116_v62 = vld [vmem:[#allocation5 + $0xe] sm:$0x1]  ;;  %v103_v0 = vand.u32 2147483647, %v102_v55  ;;  %v112_v1 = vsub.f32 %v110_v56, %v111_v57 }
  0x1a   :  { %v74_v43 = vadd.f32 %v73_v34, %v69_v38  ;;  %v120_v2 = vld [vmem:[#allocation2 + $0xf] sm:$0x1]  ;;  %v121_v3 = vld [vmem:[#allocation5 + $0xf] sm:$0x1]  ;;  %v108_v5 = vand.u32 2147483647, %v107_v60  ;;  %v117_v6 = vsub.f32 %v115_v61, %v116_v62 }
  0x1b   :  { %v113_v8 = vand.u32 2147483647, %v112_v1  ;;  %v122_v9 = vsub.f32 %v120_v2, %v121_v3  ;;  %v125_v15 = vld [vmem:[#allocation7] sm:$0x1]  ;;  %s133_s1 = sshll.u32 %s231_s0, 4  ;;  %s135_s21 = sshll.u32 %s258_s2, 4  ;;  %s134_s1 = int_to_ptr.vmem [resolvable:$true] %s133_s1  ;;  %s136_s21 = int_to_ptr.hbm [resolvable:$true] %s135_s21 }
  0x1c   :  { %v79_v48 = vadd.f32 %v78_v39, %v74_v43  ;;  %v118_v11 = vand.u32 2147483647, %v117_v6 }
  0x1d   :  { %v123_v13 = vand.u32 2147483647, %v122_v9 }
  0x1e   :  { %v84_v53 = vadd.f32 %v83_v44, %v79_v48 }
  0x20   :  { %v89_v58 = vadd.f32 %v88_v49, %v84_v53 }
  0x22   :  { %v94_v63 = vadd.f32 %v93_v54, %v89_v58 }
  0x24   :  { %v99_v4 = vadd.f32 %v98_v59, %v94_v63 }
  0x26   :  { %v104_v7 = vadd.f32 %v103_v0, %v99_v4 }
  0x28   :  { %v109_v10 = vadd.f32 %v108_v5, %v104_v7 }
  0x2a   :  { %v114_v12 = vadd.f32 %v113_v8, %v109_v10 }
  0x2c   :  { %v119_v14 = vadd.f32 %v118_v11, %v114_v12 }
  0x2e   :  { %v124_v16 = vadd.f32 %v123_v13, %v119_v14 }
  0x30   :  { %v126_v17 = vadd.f32 %v125_v15, %v124_v16 }
  0x32   :  { %127 = vst [vmem:[#allocation7] sm:$0x1] %v126_v17 }
  0x33   :  { %138 = dma.vmem_to_hbm [thread:$0]  %s134_s1, 16, %s136_s21, [#allocation4]  }
  0x34   :  { %226 = dma.done.wait [#allocation4], 16  }
  0x35   :  { %227 = vsyncadd [#allocation4], 4294967280 }
  0x36   :  { %143 = vsyncpa [#allocation3], 1 }
  0x37   :  { %144 = vsyncpa [#allocation6], 1 }
  0x38   :  { %145 = vsyncpa [#allocation4], 1 }

</bundles_post_ra>
